<compile_context>
chip_gen: v6e
topology: v6e:2x2x1
jax: 0.10.0
libtpu: 0.0.40
codegen_flags: <defaults>
</compile_context>

<pallas_src>
import functools

import jax
import jax.numpy as jnp
from jax.experimental import pallas as pl
from jax.experimental.pallas import tpu as pltpu


def _round_up(v, m):
    return ((v + m - 1) // m) * m


def _conv_kernel(x_ref, w_ref, b_ref, o_ref, *, W, KH, KW, OHW_pad, compute_dtype):
    # x_ref: (1, C_pad, HW_src) f32   w_ref: (OC, K) compute_dtype
    # b_ref: (OC, 1) f32              o_ref: (1, OC, OHW_pad) f32
    x = x_ref[0]  # (C_pad, HW_src), lane-dense

    # Build the im2col patch matrix in-register: one lane-dense, 8-row-aligned
    # static slice per kernel tap (shift over the flattened H*W axis).  Columns
    # are output positions laid out on an (OH, W) grid; the extra (garbage)
    # columns are sliced off in the wrapper.
    parts = []
    for kh in range(KH):
        for kw in range(KW):
            shift = kh * W + kw
            parts.append(x[:, shift:shift + OHW_pad])        # (C_pad, OHW_pad)
    patches = jnp.concatenate(parts, axis=0)                  # (K, OHW_pad) f32
    patches = patches.astype(compute_dtype)

    # Single MXU contraction with K = KH*KW*C_pad (instead of KH*KW dots of depth C),
    # f32 accumulation.
    acc = jnp.dot(w_ref[...], patches, preferred_element_type=jnp.float32)  # (OC, OHW_pad)
    o_ref[0] = (acc + b_ref[...]).astype(o_ref.dtype)


def conv2d_pallas(x, weight, bias, *, compute_dtype=jnp.bfloat16):
    """stride=1, padding=0, dilation=1, groups=1 (the PyTorch module defaults)."""
    N, C, H, W = x.shape
    OC, C_w, KH, KW = weight.shape
    assert C == C_w
    OH, OW = H - KH + 1, W - KW + 1
    assert OH > 0 and OW > 0

    # Lane-dense layout sizes.
    OHW = OH * W                               # output positions on an (OH, W) grid
    OHW_pad = _round_up(OHW, 128)              # unmasked 128-lane stores
    max_shift = (KH - 1) * W + (KW - 1)
    HW_src = _round_up(max(H * W, max_shift + OHW_pad), 128)
    C_pad = _round_up(C, 8)                    # (8,128)-tile aligned patch pieces
    K = KH * KW * C_pad

    # x: NCHW -> (N, C_pad, HW_src), zero padded (extra channels + lane tail).
    x_flat = jnp.zeros((N, C_pad, HW_src), x.dtype)
    x_flat = x_flat.at[:, :C, :H * W].set(x.reshape(N, C, H * W))

    # weight: OIHW -> (OC, KH*KW*C_pad) with K ordered (kh, kw, c); cast for the MXU.
    w_flat = jnp.zeros((OC, KH, KW, C_pad), weight.dtype)
    w_flat = w_flat.at[:, :, :, :C].set(jnp.transpose(weight, (0, 2, 3, 1)))
    w_flat = w_flat.reshape(OC, K).astype(compute_dtype)

    b2 = bias.reshape(OC, 1).astype(jnp.float32)

    kernel = functools.partial(
        _conv_kernel, W=W, KH=KH, KW=KW, OHW_pad=OHW_pad, compute_dtype=compute_dtype
    )

    out_flat = pl.pallas_call(
        kernel,
        out_shape=jax.ShapeDtypeStruct((N, OC, OHW_pad), x.dtype),
        grid=(N,),
        in_specs=[
            pl.BlockSpec((1, C_pad, HW_src), lambda n: (n, 0, 0)),
            pl.BlockSpec((OC, K), lambda n: (0, 0)),   # grid-invariant weight
            pl.BlockSpec((OC, 1), lambda n: (0, 0)),   # grid-invariant bias
        ],
        out_specs=pl.BlockSpec((1, OC, OHW_pad), lambda n: (n, 0, 0)),
        compiler_params=pltpu.CompilerParams(
            dimension_semantics=("parallel",),
        ),
    )(x_flat, w_flat, b2)

    # (N, OC, OH*W padded) -> NCHW (N, OC, OH, OW): drop garbage columns in wrapper.
    out = out_flat[:, :, :OHW].reshape(N, OC, OH, W)[:, :, :, :OW]
    return out


if __name__ == "__main__":
    # Small shapes consistent with the module's forward.
    N, C, H, W = 2, 4, 16, 16
    OC, KH, KW = 8, 3, 3

    key = jax.random.PRNGKey(0)
    kx, kw = jax.random.split(key)

    x = jax.random.normal(kx, (N, C, H, W), dtype=jnp.float32)
    # initialization='Uniform': weight ~ U(0, 1); bias.uniform_(0, 0) -> zeros.
    weight = jax.random.uniform(kw, (OC, C, KH, KW), dtype=jnp.float32,
                                minval=0.0, maxval=1.0)
    bias = jnp.zeros((OC,), dtype=jnp.float32)

    # Reference (same semantics as F.conv2d defaults).
    ref = jax.lax.conv_general_dilated(
        x, weight, window_strides=(1, 1), padding="VALID",
        dimension_numbers=("NCHW", "OIHW", "NCHW"),
    ) + bias[None, :, None, None]

    # f32 compute path: exact semantics check.
    out_f32 = jax.block_until_ready(
        conv2d_pallas(x, weight, bias, compute_dtype=jnp.float32))
    assert out_f32.shape == (N, OC, H - KH + 1, W - KW + 1)
    assert jnp.allclose(out_f32, ref, atol=1e-4, rtol=1e-4)

    # bf16 MXU path (default): relaxed tolerance vs the f32 reference.
    out = jax.block_until_ready(conv2d_pallas(x, weight, bias))
    assert out.shape == ref.shape
    assert jnp.allclose(out, ref, atol=2e-1, rtol=2e-2)

    print("KERNEL_OK")
</pallas_src>

<mosaic_0001>
module attributes {stable_mosaic.version = 11 : i64} {
  func.func @_conv_kernel(%arg0: i32, %arg1: memref<1x8x384xf32, #tpu.memory_space<vmem>>, %arg2: memref<8x72xf32, #tpu.memory_space<vmem>>, %arg3: memref<8x1xf32, #tpu.memory_space<vmem>>, %arg4: memref<1x8x256xf32, #tpu.memory_space<vmem>>) attributes {dimension_semantics = [#tpu.dimension_semantics<parallel>], iteration_bounds = array<i64: 2>, scalar_prefetch = 0 : i64, scratch_operands = 0 : i64, tpu.core_type = #tpu.core_type<tc>, window_params = [{transform_indices = @transform_0, window_bounds = array<i64: 1, 8, 384>}, {pipeline_mode = #tpu.pipeline_mode<synchronous>, transform_indices = @transform_1, window_bounds = array<i64: 8, 72>}, {pipeline_mode = #tpu.pipeline_mode<synchronous>, transform_indices = @transform_2, window_bounds = array<i64: 8, 1>}, {transform_indices = @transform_3, window_bounds = array<i64: 1, 8, 256>}]} {
    %c0 = arith.constant 0 : index
    %c0_0 = arith.constant 0 : index
    %c0_1 = arith.constant 0 : index
    %0 = vector.load %arg1[%c0, %c0_0, %c0_1] : memref<1x8x384xf32, #tpu.memory_space<vmem>>, vector<1x8x384xf32>
    %1 = vector.shape_cast %0 : vector<1x8x384xf32> to vector<8x384xf32>
    %2 = vector.extract_strided_slice %1 {offsets = [0, 0], sizes = [8, 256], strides = [1, 1]} : vector<8x384xf32> to vector<8x256xf32>
    %3 = vector.extract_strided_slice %1 {offsets = [0, 1], sizes = [8, 256], strides = [1, 1]} : vector<8x384xf32> to vector<8x256xf32>
    %4 = vector.extract_strided_slice %1 {offsets = [0, 2], sizes = [8, 256], strides = [1, 1]} : vector<8x384xf32> to vector<8x256xf32>
    %5 = vector.extract_strided_slice %1 {offsets = [0, 16], sizes = [8, 256], strides = [1, 1]} : vector<8x384xf32> to vector<8x256xf32>
    %6 = vector.extract_strided_slice %1 {offsets = [0, 17], sizes = [8, 256], strides = [1, 1]} : vector<8x384xf32> to vector<8x256xf32>
    %7 = vector.extract_strided_slice %1 {offsets = [0, 18], sizes = [8, 256], strides = [1, 1]} : vector<8x384xf32> to vector<8x256xf32>
    %8 = vector.extract_strided_slice %1 {offsets = [0, 32], sizes = [8, 256], strides = [1, 1]} : vector<8x384xf32> to vector<8x256xf32>
    %9 = vector.extract_strided_slice %1 {offsets = [0, 33], sizes = [8, 256], strides = [1, 1]} : vector<8x384xf32> to vector<8x256xf32>
    %10 = vector.extract_strided_slice %1 {offsets = [0, 34], sizes = [8, 256], strides = [1, 1]} : vector<8x384xf32> to vector<8x256xf32>
    %11 = tpu.concatenate %2, %3, %4, %5, %6, %7, %8, %9, %10 in 0 : vector<8x256xf32>, vector<8x256xf32>, vector<8x256xf32>, vector<8x256xf32>, vector<8x256xf32>, vector<8x256xf32>, vector<8x256xf32>, vector<8x256xf32>, vector<8x256xf32> -> vector<72x256xf32>
    %c0_2 = arith.constant 0 : index
    %c0_3 = arith.constant 0 : index
    %12 = vector.load %arg2[%c0_2, %c0_3] : memref<8x72xf32, #tpu.memory_space<vmem>>, vector<8x72xf32>
    %cst = arith.constant dense<0.000000e+00> : vector<8x256xf32>
    %13 = tpu.matmul %12, %11, %cst {dimension_numbers = #tpu.dot_dimension_numbers<[1], [0], [0], [1], [0, 0, 1, 1], [], []>} : vector<8x72xf32>, vector<72x256xf32>, vector<8x256xf32> -> vector<8x256xf32>
    %c0_4 = arith.constant 0 : index
    %c0_5 = arith.constant 0 : index
    %14 = vector.load %arg3[%c0_4, %c0_5] : memref<8x1xf32, #tpu.memory_space<vmem>>, vector<8x1xf32>
    %15 = vector.broadcast %14 : vector<8x1xf32> to vector<8x256xf32>
    %16 = arith.addf %13, %15 : vector<8x256xf32>
    %c0_6 = arith.constant 0 : index
    %c0_7 = arith.constant 0 : index
    %c0_8 = arith.constant 0 : index
    %17 = vector.load %arg4[%c0_6, %c0_7, %c0_8] : memref<1x8x256xf32, #tpu.memory_space<vmem>>, vector<1x8x256xf32>
    %18 = vector.shape_cast %17 : vector<1x8x256xf32> to vector<8x256xf32>
    %19 = vector.shape_cast %16 : vector<8x256xf32> to vector<1x8x256xf32>
    tpu.vector_store %arg4[%c0_6, %c0_7, %c0_8], %19 {strides = array<i32>} : memref<1x8x256xf32, #tpu.memory_space<vmem>>, vector<1x8x256xf32>,
    return
  }
  func.func @transform_0(%arg0: i32) -> (i32, i32, i32) {
    %c0_i32 = arith.constant 0 : i32
    %c0_i32_0 = arith.constant 0 : i32
    %c0_i32_1 = arith.constant 0 : i32
    return %arg0, %c0_i32, %c0_i32_0 : i32, i32, i32
  }
  func.func @transform_1(%arg0: i32) -> (i32, i32) {
    %c0_i32 = arith.constant 0 : i32
    %c0_i32_0 = arith.constant 0 : i32
    %c0_i32_1 = arith.constant 0 : i32
    return %c0_i32, %c0_i32_0 : i32, i32
  }
  func.func @transform_2(%arg0: i32) -> (i32, i32) {
    %c0_i32 = arith.constant 0 : i32
    %c0_i32_0 = arith.constant 0 : i32
    %c0_i32_1 = arith.constant 0 : i32
    return %c0_i32, %c0_i32_0 : i32, i32
  }
  func.func @transform_3(%arg0: i32) -> (i32, i32, i32) {
    %c0_i32 = arith.constant 0 : i32
    %c0_i32_0 = arith.constant 0 : i32
    %c0_i32_1 = arith.constant 0 : i32
    return %arg0, %c0_i32, %c0_i32_0 : i32, i32, i32
  }
}

</mosaic_0001>

<bundles_post_ra>
// kernel: tpu_custom_call.1
= control target key start
LH: loop header
LB: loop body
LE: loop exit
PB: predicated region body
PF: predicated region fallthrough
CT: control target
= control target key end

     0   :  { %8 = vsyncpa [#allocation3], 0  ;;  %s807_s0 = inlined_call_operand.hbm [shape: f32[2,8,384], index: 0, kind: input, shape index: {}]   ;;  %s808_s1 = inlined_call_operand.vmem [shape: f32[8,72], index: 1, kind: input, shape index: {}]   ;;  %s809_s2 = inlined_call_operand.vmem [shape: f32[8,1], index: 2, kind: input, shape index: {}]   ;;  %s810_s3 = inlined_call_operand.hbm [shape: f32[2,8,256], index: 3, kind: output, shape index: {}]  }
   0x1   :  { %10 = vsyncpa [#allocation3 + $0x1], 0 }
   0x2   :  { %11 = vsyncpa [#allocation4], 0 }
   0x3   :  { %13 = vsyncpa [#allocation4 + $0x1], 0  ;;  %s649_s12 = smov 0   ;;  %s651_s13 = smov 0  }
   0x4   :  { %s653_s14 = smov 0   ;;  %s655_s15 = smov 0  }
   0x5 LB: > { %s670_s16 = sadd.s32 4294967295, %s615_s15   ;;  %s450_s17 = sadd.s32 4294967294, %s615_s15   ;;  %s615_s15 = sphi %s655_s15, %s826_s15   ;;  %s611_s14 = sphi %s653_s14, %s825_s14   ;;  %s607_s13 = sphi %s651_s13, %s824_s13   ;;  %s603_s12 = sphi %s649_s12, %s823_s12  }
   0x6   : > { %s674_s18 = sadd.s32 1, %s615_s15   ;;  %s26_s19 = sadd.s32 1, %s611_s14 }
   0x7   : > { %s23_s20 = ssub.s32 %s615_s15, %s674_s18  ;;  %p33_p0 = scmp.ne.s32.totalorder %s611_s14, %s607_s13 }
   0x8   : > { %p24_p1 = scmp.eq.s32.totalorder %s23_s20, 0  ;;  %p34_p2 = scmp.eq.s32.totalorder %s615_s15, 0 }
   0x9   : > { %p39_p3 = scmp.ne.s32.totalorder %s607_s13, %s603_s12  ;;  %p40_p4 = scmp.eq.s32.totalorder %s670_s16, 0 }
   0xa   : > { %s686_s21 = scalar_select %p24_p1, %s611_s14, %s26_s19  }
   0xb   : > { %p35_p5 = por %p34_p2, %p33_p0  ;;  %p688_p6 = por %p40_p4, %p39_p3 }
   0xc   : > { %p105_p7 = scmp.eq.s32.totalorder %s670_s16, 1  ;;  %p111_p8 = scmp.eq.s32.totalorder %s450_s17, 1 }
   0xd   : > { %s813_s22 = scalar_select %p688_p6, 1, 0 }
   0xe   : > { %p478_p10 = scmp.lt.s32.totalorder %s615_s15, 2  ;;  %p695_p11 = por %p105_p7, %p33_p0 }
   0xf   : > { %p699_p12 = por %p111_p8, %p39_p3  ;;  %s137_s25 = sand.u32 1, %s611_s14  }
  0x10   : > { %s814_s23 = scalar_select %p695_p11, 1, 0 }
  0x11   : > { %s815_s24 = scalar_select %p699_p12, 1, 0 }
  0x12   : > { %s464_s26 = smul.u32 384, %s615_s15  ;;  %p710_p13 = pnand %p478_p10, %p35_p5 }
  0x13   : > { %s463_s27 = smul.u32 24, %s137_s25  ;;  %s138_s7 = scalar_lea.sflag [#allocation3], %s137_s25 }
  0x14   : > { %s708_s30 = scalar_lea.hbm %s807_s0, %s464_s26  ;;  %p525_p3 = pneg %p710_p13 }
  0x15   : > { %s141_s5 = scalar_lea.vmem [#allocation2], %s463_s27  ;;  %s523_s8 = scalar_lea.hbm %s708_s30, 384 }
  0x16   : > { %s149_s6 = sshll.u32 %s141_s5, 4  ;;  %p524_p2 = scmp.ne.s32.totalorder %s708_s30, %s523_s8  ;;  %s150_s6 = int_to_ptr.vmem [resolvable:$true] %s149_s6 }
  0x17   : > { %s528_s11 = scalar_lea.hbm %s807_s0, 768  ;;  %p529_p5 = scmp.lt.s32.totalorder %s708_s30, %s807_s0 }
  0x18   : > { %p526_p4 = pnand %p525_p3, %p524_p2  ;;  %p530_p8 = scmp.lt.s32.totalorder %s528_s11, %s523_s8 }
  0x1a   : > { %p527_p7 = pneg %p526_p4  ;;  %p531_p10 = por %p530_p8, %p529_p5 }
  0x1c   : > { %p532_p9 = pnand %p531_p10, %p527_p7 }
  0x1e   : > { %535 = shalt.err (!%p532_p9)
}
  0x1f   : > { %s536_s20 = scalar_lea.vmem %s150_s6, 384  ;;  %s617_s25 = smov [#allocation2]  }
  0x20   : > { %p537_p0 = scmp.ne.s32.totalorder %s150_s6, %s536_s20  ;;  %s541_s26 = sshll.u32 %s617_s25, 4  ;;  %s542_s26 = int_to_ptr.vmem [resolvable:$false] %s541_s26 }
  0x21   : > { %s543_s27 = scalar_lea.vmem %s542_s26, 768  ;;  %p544_p2 = scmp.lt.s32.totalorder %s150_s6, %s542_s26 }
  0x22   : > { %p539_p1 = pnand %p537_p0, %p525_p3  ;;  %p545_p4 = scmp.lt.s32.totalorder %s543_s27, %s536_s20 }
  0x24   : > { %p540_p12 = pneg %p539_p1  ;;  %p546_p11 = por %p545_p4, %p544_p2 }
  0x26   : > { %p547_p6 = pnand %p546_p11, %p540_p12 }
  0x28   : > { %550 = shalt.err (!%p547_p6)
}
  0x29   : > { %473 = dma.hbm_to_vmem [thread:$0]  (!%p710_p13), %s708_s30, 384, %s150_s6, %s138_s7  }
  0x2a   : > { %p817_p9 = scmp.lt.s32.totalorder %s615_s15, 3  ;;  %p818_p7 = scmp.ge.s32.totalorder %s615_s15, 1 }
  0x2c   : > { %p155_p5 = pnand %p818_p7, %p817_p9 }
  0x2d   : > { %s735_s28 = sand.u32 (!%p155_p5), 1, %s607_s13   ;;  %p819_p6 = scmp.ne.s32.totalorder (!%p155_p5), %s813_s22, 0 }
  0x2e   : > { %158 = sbr.rel (%p155_p5) target bundleno = 427 (0x1ab), region = 32  ;;  %s161_s5 = scalar_lea.sflag (!%p155_p5), [#allocation3], %s735_s28 }
  0x2f   : > { %s465_s29 = smul.u32 (!%p155_p5), 24, %s735_s28 }
  0x31   : > { %s164_s8 = scalar_lea.vmem (!%p155_p5), [#allocation2], %s465_s29 }
  0x33   : > { %594 = dma.done.wait (%p819_p6), %s161_s5, 384  }
  0x34   : > { %596 = vsyncadd (%p819_p6), %s161_s5, 4294966912  ;;  %v743_v0 = vld [vmem:[%s164_s8 + $0x8] sm:$0xff]  ;;  %v745_v1 = vld [vmem:[%s164_s8] sm:$0xff]  ;;  %s618_s30 = smov 94   ;;  %s619_s4 = smov 95   ;;  %v624_v3 = vmov 0.0  }
  0x35   : > { %272 = vrot.lane.b32.xlu0 %v743_v0, %s618_s30  ;;  %270 = vrot.lane.b32.xlu1 %v745_v1, %s618_s30  ;;  %v189_v2 = vld [vmem:[%s164_s8 + $0x10] sm:$0xff]  ;;  %s620_s6 = smov 96   ;;  %s621_s22 = smov 110   ;;  %v626_v4 = vmov 0   ;;  %v282_v5 = vld [vmem:[%s809_s2] sm:$0xff]  ;;  %vm276_vm0 = vcmask 769024  }
  0x36   : > { %s622_s7 = smov 111   ;;  %s623_s9 = smov 112   ;;  %356 = vmatprep.mubr.f32.mxu0 %v624_v3  ;;  %522 = vset.pattern.permute.xlu0 %v626_v4  ;;  %vm265_vm1 = vcmask 777216   ;;  %vm254_vm2 = vcmask 785408   ;;  %vm243_vm3 = vcmask 900096   ;;  %vm232_vm4 = vcmask 908288  }
  0x37   : > { %s625_s10 = smov 126   ;;  %s627_s11 = smov 127   ;;  %vm221_vm5 = vcmask 916480   ;;  %vm210_vm6 = vcmask 1031168   ;;  %vm199_vm7 = vcmask 1039360   ;;  %v281_v46 = vld [vmem:[%s808_s1] sm:$0xff] }
  0x38   : > { %vm288_vm8 = vcmask 588800   ;;  %s455_s26 = sshll.u32 %s735_s28, 4  ;;  %s462_s27 = sshll.u32 %s670_s16, 8 }
  0x39   : > { %274 = vrot.lane.b32.xlu0 %v189_v2, %s618_s30  ;;  %261 = vrot.lane.b32.xlu1 %v743_v0, %s619_s4  ;;  %s186_s29 = scalar_lea.vmem [#allocation5], %s455_s26  ;;  %p820_p12 = scmp.ne.s32.totalorder %s814_s23, 0 }
  0x3a   : > { %s380_s5 = sshll.u32 %s186_s29, 4  ;;  %s381_s5 = int_to_ptr.vmem [resolvable:$true] %s380_s5 }
  0x3d   : > { %263 = vrot.lane.b32.xlu0 %v189_v2, %s619_s4  ;;  %259 = vrot.lane.b32.xlu1 %v745_v1, %s619_s4  ;;  %s378_s4 = scalar_lea.hbm %s810_s3, %s462_s27 }
  0x41   : > { %250 = vrot.lane.b32.xlu0 %v743_v0, %s620_s6  ;;  %252 = vrot.lane.b32.xlu1 %v189_v2, %s620_s6 }
  0x45   : > { %248 = vrot.lane.b32.xlu0 %v745_v1, %s620_s6  ;;  %239 = vrot.lane.b32.xlu1 %v743_v0, %s621_s22  ;;  %s366_s6 = scalar_lea.sflag [#allocation4], %s735_s28 }
  0x49   : > { %241 = vrot.lane.b32.xlu0 %v189_v2, %s621_s22  ;;  %237 = vrot.lane.b32.xlu1 %v745_v1, %s621_s22  ;;  %s551_s22 = scalar_lea.vmem %s381_s5, 256 }
  0x4a   : > { %p552_p11 = scmp.ne.s32.totalorder %s381_s5, %s551_s22 }
  0x4c   : > { %p553_p13 = pnand %p552_p11, %p820_p12 }
  0x4d   : > { %228 = vrot.lane.b32.xlu0 %v743_v0, %s622_s7  ;;  %230 = vrot.lane.b32.xlu1 %v189_v2, %s622_s7 }
  0x4e   : > { %p554_p0 = pneg %p553_p13 }
  0x51   : > { %226 = vrot.lane.b32.xlu0 %v745_v1, %s622_s7  ;;  %217 = vrot.lane.b32.xlu1 %v743_v0, %s623_s9  ;;  %s628_s7 = smov [#allocation5]  }
  0x52   : > { %s555_s16 = sshll.u32 %s628_s7, 4  ;;  %s556_s16 = int_to_ptr.vmem [resolvable:$false] %s555_s16 }
  0x53   : > { %p558_p1 = scmp.lt.s32.totalorder %s381_s5, %s556_s16 }
  0x55   : > { %219 = vrot.lane.b32.xlu0 %v189_v2, %s623_s9  ;;  %215 = vrot.lane.b32.xlu1 %v745_v1, %s623_s9  ;;  %s557_s9 = scalar_lea.vmem %s556_s16, 512 }
  0x56   : > { %p559_p3 = scmp.lt.s32.totalorder %s557_s9, %s551_s22 }
  0x58   : > { %p560_p8 = por %p559_p3, %p558_p1 }
  0x59   : > { %206 = vrot.lane.b32.xlu0 %v743_v0, %s625_s10  ;;  %208 = vrot.lane.b32.xlu1 %v189_v2, %s625_s10 }
  0x5a   : > { %p561_p10 = pnand %p560_p8, %p554_p0 }
  0x5d   : > { %204 = vrot.lane.b32.xlu0 %v745_v1, %s625_s10  ;;  %195 = vrot.lane.b32.xlu1 %v743_v0, %s627_s11 }
  0x61   : > { %197 = vrot.lane.b32.xlu0 %v189_v2, %s627_s11  ;;  %193 = vrot.lane.b32.xlu1 %v745_v1, %s627_s11 }
  0x65   : > { %285 = vperm.xlu0 %522, %v282_v5  }
  0xa7   : > { %v273_v6 = vpop.permute.xlu0 %272  ;;  %v271_v7 = vpop.permute.xlu1 %270 }
  0xa8   : > { %v277_v11 = vsel %vm276_vm0, %v271_v7, %v273_v6 }
  0xab   : > { %v275_v8 = vpop.permute.xlu0 %274  ;;  %v262_v9 = vpop.permute.xlu1 %261 }
  0xac   : > { %v278_v10 = vsel %vm276_vm0, %v273_v6, %v275_v8 }
  0xad   : > { %306 = vmatprep.subr.mxu0 %v278_v10 }
  0xae   : > { %307 = vmatpush1.msra.mxu0 %v277_v11 }
  0xaf   : > { %v264_v12 = vpop.permute.xlu0 %263  ;;  %v260_v13 = vpop.permute.xlu1 %259 }
  0xb0   : > { %v267_v14 = vsel %vm265_vm1, %v262_v9, %v264_v12  ;;  %v266_v15 = vsel %vm265_vm1, %v260_v13, %v262_v9 }
  0xb1   : > { %308 = vmatprep.subr.mxu0 %v267_v14 }
  0xb2   : > { %309 = vmatpush1.msra.mxu0 %v266_v15 }
  0xb3   : > { %v251_v16 = vpop.permute.xlu0 %250  ;;  %v253_v17 = vpop.permute.xlu1 %252 }
  0xb4   : > { %v256_v18 = vsel %vm254_vm2, %v251_v16, %v253_v17 }
  0xb5   : > { %310 = vmatprep.subr.mxu0 %v256_v18 }
  0xb7   : > { %v249_v19 = vpop.permute.xlu0 %248  ;;  %v240_v20 = vpop.permute.xlu1 %239 }
  0xb8   : > { %v255_v21 = vsel %vm254_vm2, %v249_v19, %v251_v16 }
  0xb9   : > { %311 = vmatpush1.msra.mxu0 %v255_v21 }
  0xbb   : > { %v242_v22 = vpop.permute.xlu0 %241  ;;  %v238_v23 = vpop.permute.xlu1 %237 }
  0xbc   : > { %v245_v24 = vsel %vm243_vm3, %v240_v20, %v242_v22  ;;  %v244_v25 = vsel %vm243_vm3, %v238_v23, %v240_v20 }
  0xbd   : > { %312 = vmatprep.subr.mxu0 %v245_v24 }
  0xbe   : > { %313 = vmatpush1.msra.mxu0 %v244_v25 }
  0xbf   : > { %v229_v26 = vpop.permute.xlu0 %228  ;;  %v231_v27 = vpop.permute.xlu1 %230 }
  0xc0   : > { %v234_v28 = vsel %vm232_vm4, %v229_v26, %v231_v27 }
  0xc1   : > { %314 = vmatprep.subr.mxu0 %v234_v28 }
  0xc3   : > { %v227_v29 = vpop.permute.xlu0 %226  ;;  %v218_v30 = vpop.permute.xlu1 %217 }
  0xc4   : > { %v233_v31 = vsel %vm232_vm4, %v227_v29, %v229_v26 }
  0xc5   : > { %315 = vmatpush1.msra.mxu0 %v233_v31 }
  0xc7   : > { %v220_v32 = vpop.permute.xlu0 %219  ;;  %v216_v33 = vpop.permute.xlu1 %215 }
  0xc8   : > { %v223_v34 = vsel %vm221_vm5, %v218_v30, %v220_v32  ;;  %v222_v35 = vsel %vm221_vm5, %v216_v33, %v218_v30 }
  0xc9   : > { %316 = vmatprep.subr.mxu0 %v223_v34 }
  0xca   : > { %317 = vmatpush1.msra.mxu0 %v222_v35 }
  0xcb   : > { %v207_v36 = vpop.permute.xlu0 %206  ;;  %v209_v37 = vpop.permute.xlu1 %208 }
  0xcc   : > { %v212_v38 = vsel %vm210_vm6, %v207_v36, %v209_v37 }
  0xcd   : > { %318 = vmatprep.subr.mxu0 %v212_v38 }
  0xcf   : > { %v205_v39 = vpop.permute.xlu0 %204  ;;  %v196_v40 = vpop.permute.xlu1 %195 }
  0xd0   : > { %v211_v41 = vsel %vm210_vm6, %v205_v39, %v207_v36 }
  0xd1   : > { %319 = vmatpush1.msra.mxu0 %v211_v41 }
  0xd3   : > { %v198_v42 = vpop.permute.xlu0 %197  ;;  %v194_v43 = vpop.permute.xlu1 %193 }
  0xd4   : > { %v201_v44 = vsel %vm199_vm7, %v196_v40, %v198_v42  ;;  %v200_v45 = vsel %vm199_vm7, %v194_v43, %v196_v40 }
  0xd5   : > { %320 = vmatprep.subr.mxu0 %v201_v44 }
  0xd6   : > { %321 = vmatpush1.msra.mxu0 %v200_v45 }
  0xd7   : > { %322 = vmatprep.subr.mxu0 %v743_v0 }
  0xd8   : > { %323 = vmatpush1.msra.mxu0 %v745_v1 }
  0xd9   : > { %456 = vmatmul.mubr.msk.f32.vlgmr.msra.gmra.mxu0 %vm288_vm8, %v281_v46 }
  0xe0   : > { %v286_v47 = vpop.permute.xlu0 %285 }
 0x199   : > { %v358_v48 = vpop.f32.mrf.mxu0 }
 0x19a   : > { %v359_v49 = vadd.f32 %v358_v48, %v286_v47 }
 0x19b   : > { %v360_v50 = vpop.f32.mrf.mxu0 }
 0x19c   : > { %363 = vst [vmem:[%s186_s29] sm:$0xff] %v359_v49  ;;  %v361_v51 = vadd.f32 %v360_v50, %v286_v47 }
 0x19e   : > { %364 = vst [vmem:[%s186_s29 + $0x8] sm:$0xff] %v361_v51 }
 0x19f   : > { %564 = shalt.err (!%p561_p10)
}
 0x1a0   : > { %s565_s10 = scalar_lea.hbm %s378_s4, 256  ;;  %s569_s17 = scalar_lea.hbm %s810_s3, 512 }
 0x1a1   : > { %p566_p2 = scmp.ne.s32.totalorder %s378_s4, %s565_s10  ;;  %p570_p7 = scmp.lt.s32.totalorder %s378_s4, %s810_s3 }
 0x1a2   : > { %p571_p5 = scmp.lt.s32.totalorder %s569_s17, %s565_s10 }
 0x1a3   : > { %p567_p4 = pnand %p566_p2, %p820_p12 }
 0x1a4   : > { %p572_p6 = por %p571_p5, %p570_p7 }
 0x1a5   : > { %p568_p9 = pneg %p567_p4 }
 0x1a7   : > { %p573_p11 = pnand %p572_p6, %p568_p9 }
 0x1a9   : > { %576 = shalt.err (!%p573_p11)
}
 0x1aa   : > { %468 = dma.vmem_to_hbm [thread:$0]  (%p820_p12), %s381_s5, 256, %s378_s4, %s366_s6  }
 0x1ab PF: > { %s392_s25 = sand.u32 1, %s603_s12   ;;  %p821_p13 = scmp.ne.s32.totalorder %s815_s24, 0 }
 0x1ac   : > { %p822_p0 = scmp.ge.s32.totalorder %s615_s15, 2  ;;  %s393_s26 = scalar_lea.sflag [#allocation4], %s392_s25 }
 0x1ae   : > { %p475_p1 = pnand %p822_p0, %p821_p13 }
 0x1b0   : > { %p476_p3 = pneg %p475_p1 }
 0x1b2   : > { %598 = dma.done.wait (%p476_p3), %s393_s26, 256  }
 0x1b3   : > { %600 = vsyncadd (%p476_p3), %s393_s26, 4294967040  ;;  %p16_p8 = scmp.ge.s32.totalorder %s674_s18, 4   ;;  %s823_s12 = smov %s607_s13 }
 0x1b4   : > { %s824_s13 = smov %s611_s14  ;;  %s825_s14 = smov %s686_s21 }
 0x1b5   : > { %s826_s15 = smov %s674_s18  ;;  %18 = sbr.rel (!%p16_p8) target bundleno = 5 (0x5), region = 77 }
 0x1ba   :  { %398 = vsyncpa [#allocation3], 1 }
 0x1bb   :  { %400 = vsyncpa [#allocation3 + $0x1], 1 }
 0x1bc   :  { %401 = vsyncpa [#allocation4], 1 }
 0x1bd   :  { %403 = vsyncpa [#allocation4 + $0x1], 1 }

</bundles_post_ra>
